<compile_context>
chip_gen: v7x
topology: tpu7x:2x2x1
jax: 0.10.0
libtpu: 0.0.40
codegen_flags: <defaults>
</compile_context>

<pallas_src>
import math

import jax
import jax.numpy as jnp
import numpy as np
from jax.experimental import pallas as pl
from jax.experimental.pallas import tpu as pltpu


def _make_mha_kernel(n_head, d_k, d_v, return_attn):
    def mha_kernel(q_ref, k_ref, v_ref, wq_ref, bq_ref, wk_ref, bk_ref, *rest):
        if return_attn:
            out_ref, attn_ref, kp_ref, qh_ref = rest
        else:
            out_ref, kp_ref, qh_ref = rest
            attn_ref = None

        qi = pl.program_id(1)

        # Cache the all-head K projection (head-major, bf16) once per batch element;
        # it is reused across every q tile of this batch. Lane-dense MXU matmul with
        # f32 accumulation; the per-head lane slices run only once per batch element.
        @pl.when(qi == 0)
        def _():
            kp = jnp.dot(k_ref[0], wk_ref[...],
                         preferred_element_type=jnp.float32) + bk_ref[...]
            for h in range(n_head):
                kp_ref[h] = kp[:, h * d_k:(h + 1) * d_k].astype(jnp.bfloat16)

        # Fused all-head Q projection; 1/temperature already folded into wq/bq by the
        # wrapper, so no per-score scaling is needed later.
        qp = jnp.dot(q_ref[0], wq_ref[...],
                     preferred_element_type=jnp.float32) + bq_ref[...]
        for h in range(n_head):
            qh_ref[h] = qp[:, h * d_k:(h + 1) * d_k].astype(jnp.bfloat16)

        # Batched-over-heads Q @ K^T on bf16 operands -> (n_head, tq, len_k) f32.
        scores = jnp.einsum('hqd,hkd->hqk', qh_ref[...], kp_ref[...],
                            preferred_element_type=jnp.float32)

        # Numerically-stable softmax over keys; all math in f32. Exact reciprocal to
        # preserve parity with the PyTorch module.
        scores = scores - jnp.max(scores, axis=-1, keepdims=True)
        e = jnp.exp(scores)
        probs = e * pl.reciprocal(jnp.sum(e, axis=-1, keepdims=True), approx=False)

        # Per-head P @ V, written directly into the final head-major output layout
        # (write-as-you-go: bounded live ranges, no concatenate).
        vb = v_ref[0]                                   # (len_v, d_v) bf16
        for h in range(n_head):
            p_h = probs[h]                              # (tq, len_k) f32
            if return_attn:
                attn_ref[h, 0] = p_h.astype(attn_ref.dtype)
            oh = jnp.dot(p_h.astype(jnp.bfloat16), vb,
                         preferred_element_type=jnp.float32)      # (tq, d_v)
            out_ref[0, :, h * d_v:(h + 1) * d_v] = oh.astype(out_ref.dtype)

    return mha_kernel


def multi_head_attention(q, k, v, wq_fused, bq_fused, wk_fused, bk_fused,
                         n_head, d_k, d_v, *, return_attn=True, q_tile=None):
    """Pallas-backed forward matching PyTorch MultiHeadAttention.forward (eval mode).

    Args:
      q, k: (sz_b, len, d_model) float32
      v:    (sz_b, len_v, d_v)   float32
      wq_fused, wk_fused: (d_model, n_head*d_k)  (torch Linear weight, transposed)
      bq_fused, bk_fused: (1, n_head*d_k)
      return_attn: if False, skip writing the attention probabilities back to HBM.
    Returns:
      output: (sz_b, len_q, n_head*d_v) float32
      attn:   (n_head*sz_b, len_q, len_k) float32, or None if return_attn=False
    """
    sz_b, len_q, d_model = q.shape
    _, len_k, _ = k.shape
    _, len_v, _ = v.shape
    assert len_k == len_v, "attention requires len_k == len_v"
    inv_temp = 1.0 / float(np.power(d_k, 0.5))

    if q_tile is None:
        q_tile = 128 if (len_q % 128 == 0) else len_q
    assert len_q % q_tile == 0
    n_q = len_q // q_tile

    # bf16 operands for the MXU; fold 1/temperature into the Q projection weights/bias
    # (one host-side scale instead of scaling every (len_q, len_k) score matrix).
    q_b = q.astype(jnp.bfloat16)
    k_b = k.astype(jnp.bfloat16)
    v_b = v.astype(jnp.bfloat16)
    wq_s = (wq_fused.astype(jnp.float32) * inv_temp).astype(jnp.bfloat16)
    bq_s = (bq_fused.astype(jnp.float32) * inv_temp)
    wk_b = wk_fused.astype(jnp.bfloat16)
    bk_f = bk_fused.astype(jnp.float32)

    kernel = _make_mha_kernel(n_head, d_k, d_v, return_attn)

    in_specs = [
        pl.BlockSpec((1, q_tile, d_model), lambda b, qi: (b, qi, 0)),      # q tile
        pl.BlockSpec((1, len_k, d_model), lambda b, qi: (b, 0, 0)),        # k (whole seq)
        pl.BlockSpec((1, len_v, d_v), lambda b, qi: (b, 0, 0)),            # v (whole seq)
        pl.BlockSpec((d_model, n_head * d_k), lambda b, qi: (0, 0)),       # wq (resident)
        pl.BlockSpec((1, n_head * d_k), lambda b, qi: (0, 0)),             # bq
        pl.BlockSpec((d_model, n_head * d_k), lambda b, qi: (0, 0)),       # wk (resident)
        pl.BlockSpec((1, n_head * d_k), lambda b, qi: (0, 0)),             # bk
    ]
    out_shape = [jax.ShapeDtypeStruct((sz_b, len_q, n_head * d_v), jnp.float32)]
    out_specs = [pl.BlockSpec((1, q_tile, n_head * d_v), lambda b, qi: (b, qi, 0))]
    if return_attn:
        out_shape.append(
            jax.ShapeDtypeStruct((n_head, sz_b, len_q, len_k), jnp.float32))
        out_specs.append(
            pl.BlockSpec((n_head, 1, q_tile, len_k), lambda b, qi: (0, b, qi, 0)))

    scratch_shapes = [
        pltpu.VMEM((n_head, len_k, d_k), jnp.bfloat16),   # cached head-major K projection
        pltpu.VMEM((n_head, q_tile, d_k), jnp.bfloat16),  # head-major Q projection tile
    ]

    # Scoped-VMEM limit from the double-buffered per-step working set, capped at 64 MiB
    # so the same setting is valid on v7x (64 MiB physical VMEM) as well as v5e/v6e.
    blk_bytes = (q_tile * d_model * 2 + len_k * d_model * 2 + len_v * d_v * 2 +
                 q_tile * n_head * d_v * 4 +
                 (n_head * q_tile * len_k * 4 if return_attn else 0))
    w_bytes = 2 * (d_model * n_head * d_k * 2) + 2 * (n_head * d_k * 4)
    scratch_bytes = n_head * (len_k + q_tile) * d_k * 2
    vmem_limit = int(min(max(4 * (2 * blk_bytes + w_bytes + scratch_bytes), 8 << 20),
                         64 << 20))

    results = pl.pallas_call(
        kernel,
        out_shape=out_shape,
        grid=(sz_b, n_q),
        in_specs=in_specs,
        out_specs=out_specs,
        scratch_shapes=scratch_shapes,
        compiler_params=pltpu.CompilerParams(
            dimension_semantics=("parallel", "arbitrary"),
            vmem_limit_bytes=vmem_limit),
    )(q_b, k_b, v_b, wq_s, bq_s, wk_b, bk_f)

    out = results[0]
    if not return_attn:
        return out, None
    # (n_head, sz_b, len_q, len_k) -> (n_head*sz_b, len_q, len_k): contiguous head-major
    # view, no data movement — matches torch's ordering.
    attn = results[1].reshape(n_head * sz_b, len_q, len_k)
    return out, attn


def _reference_mha(q, k, v, wq_fused, bq_fused, wk_fused, bk_fused,
                   n_head, d_k, d_v):
    """Pure-JAX f32 reference mirroring the PyTorch forward exactly."""
    sz_b, len_q, _ = q.shape
    _, len_k, _ = k.shape
    _, len_v, _ = v.shape
    temperature = np.power(d_k, 0.5)

    qp = q @ wq_fused + bq_fused                     # (sz_b, len_q, n_head*d_k)
    kp = k @ wk_fused + bk_fused                     # (sz_b, len_k, n_head*d_k)
    qp = jnp.transpose(qp.reshape(sz_b, len_q, n_head, d_k), (2, 0, 1, 3)).reshape(-1, len_q, d_k)
    kp = jnp.transpose(kp.reshape(sz_b, len_k, n_head, d_k), (2, 0, 1, 3)).reshape(-1, len_k, d_k)
    vh = jnp.broadcast_to(v[None], (n_head,) + v.shape).reshape(-1, len_v, d_v)

    attn = jnp.einsum("bqd,bkd->bqk", qp, kp) / temperature
    attn = jax.nn.softmax(attn, axis=-1)
    out = jnp.einsum("bqk,bkv->bqv", attn, vh)
    out = jnp.transpose(out.reshape(n_head, sz_b, len_q, d_v), (1, 2, 0, 3)).reshape(sz_b, len_q, -1)
    return out, attn


if __name__ == "__main__":
    # Small shapes consistent with the module.
    n_head, d_model, d_k, d_v = 2, 32, 8, 16
    sz_b, len_q, len_k, len_v = 2, 8, 8, 8

    key = jax.random.PRNGKey(0)
    kq, kk, kv, kwq, kwk, kbq, kbk = jax.random.split(key, 7)

    q = jax.random.normal(kq, (sz_b, len_q, d_model), dtype=jnp.float32)
    k = jax.random.normal(kk, (sz_b, len_k, d_model), dtype=jnp.float32)
    v = jax.random.normal(kv, (sz_b, len_v, d_v), dtype=jnp.float32)

    # Deterministic parameter init mirroring the PyTorch __init__:
    #  - weights ~ Normal(0, sqrt(2 / (d_model + d_k)))  (torch Linear layout (out, in))
    #  - biases  ~ Uniform(-1/sqrt(d_model), 1/sqrt(d_model))  (torch Linear default)
    std = math.sqrt(2.0 / (d_model + d_k))
    bound = 1.0 / math.sqrt(d_model)
    Wq = std * jax.random.normal(kwq, (n_head * d_k, d_model), dtype=jnp.float32)
    Wk = std * jax.random.normal(kwk, (n_head * d_k, d_model), dtype=jnp.float32)
    bq = jax.random.uniform(kbq, (n_head * d_k,), minval=-bound, maxval=bound,
                            dtype=jnp.float32)
    bk = jax.random.uniform(kbk, (n_head * d_k,), minval=-bound, maxval=bound,
                            dtype=jnp.float32)

    # Fused layouts: W^T -> (d_model, n_head*d_k), head-major columns.
    wq_fused = Wq.T
    wk_fused = Wk.T
    bq_fused = bq.reshape(1, n_head * d_k)
    bk_fused = bk.reshape(1, n_head * d_k)

    output, attn = multi_head_attention(
        q, k, v, wq_fused, bq_fused, wk_fused, bk_fused, n_head, d_k, d_v,
        return_attn=True)
    output, attn = jax.block_until_ready((output, attn))

    ref_out, ref_attn = _reference_mha(
        q, k, v, wq_fused, bq_fused, wk_fused, bk_fused, n_head, d_k, d_v)

    # Tolerances account for bf16 operands on the MXU (f32 accumulation, f32 softmax).
    np.testing.assert_allclose(np.asarray(output), np.asarray(ref_out),
                               rtol=3e-2, atol=3e-2)
    np.testing.assert_allclose(np.asarray(attn), np.asarray(ref_attn),
                               rtol=3e-2, atol=3e-2)

    assert output.shape == (sz_b, len_q, n_head * d_v)
    assert attn.shape == (n_head * sz_b, len_q, len_k)

    # Also exercise the attn-probs-free path (drops the dominant HBM writeback).
    output2, attn2 = multi_head_attention(
        q, k, v, wq_fused, bq_fused, wk_fused, bk_fused, n_head, d_k, d_v,
        return_attn=False)
    output2 = jax.block_until_ready(output2)
    assert attn2 is None
    np.testing.assert_allclose(np.asarray(output2), np.asarray(ref_out),
                               rtol=3e-2, atol=3e-2)

    print("KERNEL_OK")
</pallas_src>

<mosaic_0001>
module attributes {stable_mosaic.version = 11 : i64} {
  func.func @mha_kernel(%arg0: i32, %arg1: i32, %arg2: memref<1x8x32xbf16, #tpu.memory_space<vmem>>, %arg3: memref<1x8x32xbf16, #tpu.memory_space<vmem>>, %arg4: memref<1x8x16xbf16, #tpu.memory_space<vmem>>, %arg5: memref<32x16xbf16, #tpu.memory_space<vmem>>, %arg6: memref<1x16xf32, #tpu.memory_space<vmem>>, %arg7: memref<32x16xbf16, #tpu.memory_space<vmem>>, %arg8: memref<1x16xf32, #tpu.memory_space<vmem>>, %arg9: memref<1x8x32xf32, #tpu.memory_space<vmem>>, %arg10: memref<2x1x8x8xf32, #tpu.memory_space<vmem>>, %arg11: memref<2x8x8xbf16, #tpu.memory_space<vmem>>, %arg12: memref<2x8x8xbf16, #tpu.memory_space<vmem>>) attributes {dimension_semantics = [#tpu.dimension_semantics<parallel>, #tpu.dimension_semantics<arbitrary>], iteration_bounds = array<i64: 2, 1>, scalar_prefetch = 0 : i64, scratch_operands = 2 : i64, tpu.core_type = #tpu.core_type<tc>, window_params = [{transform_indices = @transform_0, window_bounds = array<i64: 1, 8, 32>}, {transform_indices = @transform_1, window_bounds = array<i64: 1, 8, 32>}, {transform_indices = @transform_2, window_bounds = array<i64: 1, 8, 16>}, {pipeline_mode = #tpu.pipeline_mode<synchronous>, transform_indices = @transform_3, window_bounds = array<i64: 32, 16>}, {pipeline_mode = #tpu.pipeline_mode<synchronous>, transform_indices = @transform_4, window_bounds = array<i64: 1, 16>}, {pipeline_mode = #tpu.pipeline_mode<synchronous>, transform_indices = @transform_5, window_bounds = array<i64: 32, 16>}, {pipeline_mode = #tpu.pipeline_mode<synchronous>, transform_indices = @transform_6, window_bounds = array<i64: 1, 16>}, {transform_indices = @transform_7, window_bounds = array<i64: 1, 8, 32>}, {transform_indices = @transform_8, window_bounds = array<i64: 2, 1, 8, 8>}]} {
    %c0_i32 = arith.constant 0 : i32
    %0 = arith.cmpi eq, %arg1, %c0_i32 : i32
    %1 = arith.extui %0 : i1 to i32
    %c0_i32_0 = arith.constant 0 : i32
    %2 = arith.cmpi ne, %1, %c0_i32_0 : i32
    scf.if %2 {
      %c0_39 = arith.constant 0 : index
      %c0_40 = arith.constant 0 : index
      %c0_41 = arith.constant 0 : index
      %55 = vector.load %arg3[%c0_39, %c0_40, %c0_41] : memref<1x8x32xbf16, #tpu.memory_space<vmem>>, vector<1x8x32xbf16>
      %56 = vector.shape_cast %55 : vector<1x8x32xbf16> to vector<8x32xbf16>
      %c0_42 = arith.constant 0 : index
      %c0_43 = arith.constant 0 : index
      %57 = vector.load %arg7[%c0_42, %c0_43] : memref<32x16xbf16, #tpu.memory_space<vmem>>, vector<32x16xbf16>
      %cst_44 = arith.constant dense<0.000000e+00> : vector<8x16xf32>
      %58 = tpu.matmul %56, %57, %cst_44 {dimension_numbers = #tpu.dot_dimension_numbers<[1], [0], [0], [1], [0, 0, 1, 1], [], []>} : vector<8x32xbf16>, vector<32x16xbf16>, vector<8x16xf32> -> vector<8x16xf32>
      %c0_45 = arith.constant 0 : index
      %c0_46 = arith.constant 0 : index
      %59 = vector.load %arg8[%c0_45, %c0_46] : memref<1x16xf32, #tpu.memory_space<vmem>>, vector<1x16xf32>
      %60 = vector.broadcast %59 : vector<1x16xf32> to vector<8x16xf32>
      %61 = arith.addf %58, %60 : vector<8x16xf32>
      %62 = vector.extract_strided_slice %61 {offsets = [0, 0], sizes = [8, 8], strides = [1, 1]} : vector<8x16xf32> to vector<8x8xf32>
      %63 = arith.truncf %62 : vector<8x8xf32> to vector<8x8xbf16>
      %c0_47 = arith.constant 0 : index
      %c0_48 = arith.constant 0 : index
      %c0_49 = arith.constant 0 : index
      %64 = vector.load %arg11[%c0_47, %c0_48, %c0_49] : memref<2x8x8xbf16, #tpu.memory_space<vmem>>, vector<1x8x8xbf16>
      %65 = vector.shape_cast %64 : vector<1x8x8xbf16> to vector<8x8xbf16>
      %66 = vector.shape_cast %63 : vector<8x8xbf16> to vector<1x8x8xbf16>
      tpu.vector_store %arg11[%c0_47, %c0_48, %c0_49], %66 {strides = array<i32>} : memref<2x8x8xbf16, #tpu.memory_space<vmem>>, vector<1x8x8xbf16>,
      %67 = vector.extract_strided_slice %61 {offsets = [0, 8], sizes = [8, 8], strides = [1, 1]} : vector<8x16xf32> to vector<8x8xf32>
      %68 = arith.truncf %67 : vector<8x8xf32> to vector<8x8xbf16>
      %c1_50 = arith.constant 1 : index
      %c0_51 = arith.constant 0 : index
      %c0_52 = arith.constant 0 : index
      %69 = vector.load %arg11[%c1_50, %c0_51, %c0_52] : memref<2x8x8xbf16, #tpu.memory_space<vmem>>, vector<1x8x8xbf16>
      %70 = vector.shape_cast %69 : vector<1x8x8xbf16> to vector<8x8xbf16>
      %71 = vector.shape_cast %68 : vector<8x8xbf16> to vector<1x8x8xbf16>
      tpu.vector_store %arg11[%c1_50, %c0_51, %c0_52], %71 {strides = array<i32>} : memref<2x8x8xbf16, #tpu.memory_space<vmem>>, vector<1x8x8xbf16>,
    } else {
    }
    %c0 = arith.constant 0 : index
    %c0_1 = arith.constant 0 : index
    %c0_2 = arith.constant 0 : index
    %3 = vector.load %arg2[%c0, %c0_1, %c0_2] : memref<1x8x32xbf16, #tpu.memory_space<vmem>>, vector<1x8x32xbf16>
    %4 = vector.shape_cast %3 : vector<1x8x32xbf16> to vector<8x32xbf16>
    %c0_3 = arith.constant 0 : index
    %c0_4 = arith.constant 0 : index
    %5 = vector.load %arg5[%c0_3, %c0_4] : memref<32x16xbf16, #tpu.memory_space<vmem>>, vector<32x16xbf16>
    %cst = arith.constant dense<0.000000e+00> : vector<8x16xf32>
    %6 = tpu.matmul %4, %5, %cst {dimension_numbers = #tpu.dot_dimension_numbers<[1], [0], [0], [1], [0, 0, 1, 1], [], []>} : vector<8x32xbf16>, vector<32x16xbf16>, vector<8x16xf32> -> vector<8x16xf32>
    %c0_5 = arith.constant 0 : index
    %c0_6 = arith.constant 0 : index
    %7 = vector.load %arg6[%c0_5, %c0_6] : memref<1x16xf32, #tpu.memory_space<vmem>>, vector<1x16xf32>
    %8 = vector.broadcast %7 : vector<1x16xf32> to vector<8x16xf32>
    %9 = arith.addf %6, %8 : vector<8x16xf32>
    %10 = vector.extract_strided_slice %9 {offsets = [0, 0], sizes = [8, 8], strides = [1, 1]} : vector<8x16xf32> to vector<8x8xf32>
    %11 = arith.truncf %10 : vector<8x8xf32> to vector<8x8xbf16>
    %c0_7 = arith.constant 0 : index
    %c0_8 = arith.constant 0 : index
    %c0_9 = arith.constant 0 : index
    %12 = vector.load %arg12[%c0_7, %c0_8, %c0_9] : memref<2x8x8xbf16, #tpu.memory_space<vmem>>, vector<1x8x8xbf16>
    %13 = vector.shape_cast %12 : vector<1x8x8xbf16> to vector<8x8xbf16>
    %14 = vector.shape_cast %11 : vector<8x8xbf16> to vector<1x8x8xbf16>
    tpu.vector_store %arg12[%c0_7, %c0_8, %c0_9], %14 {strides = array<i32>} : memref<2x8x8xbf16, #tpu.memory_space<vmem>>, vector<1x8x8xbf16>,
    %15 = vector.extract_strided_slice %9 {offsets = [0, 8], sizes = [8, 8], strides = [1, 1]} : vector<8x16xf32> to vector<8x8xf32>
    %16 = arith.truncf %15 : vector<8x8xf32> to vector<8x8xbf16>
    %c1 = arith.constant 1 : index
    %c0_10 = arith.constant 0 : index
    %c0_11 = arith.constant 0 : index
    %17 = vector.load %arg12[%c1, %c0_10, %c0_11] : memref<2x8x8xbf16, #tpu.memory_space<vmem>>, vector<1x8x8xbf16>
    %18 = vector.shape_cast %17 : vector<1x8x8xbf16> to vector<8x8xbf16>
    %19 = vector.shape_cast %16 : vector<8x8xbf16> to vector<1x8x8xbf16>
    tpu.vector_store %arg12[%c1, %c0_10, %c0_11], %19 {strides = array<i32>} : memref<2x8x8xbf16, #tpu.memory_space<vmem>>, vector<1x8x8xbf16>,
    %c0_12 = arith.constant 0 : index
    %c0_13 = arith.constant 0 : index
    %c0_14 = arith.constant 0 : index
    %20 = vector.load %arg12[%c0_12, %c0_13, %c0_14] : memref<2x8x8xbf16, #tpu.memory_space<vmem>>, vector<2x8x8xbf16>
    %c0_15 = arith.constant 0 : index
    %c0_16 = arith.constant 0 : index
    %c0_17 = arith.constant 0 : index
    %21 = vector.load %arg11[%c0_15, %c0_16, %c0_17] : memref<2x8x8xbf16, #tpu.memory_space<vmem>>, vector<2x8x8xbf16>
    "tpu.trace_start"() <{level = 10 : i32, message = "hqd,hkd->hqk"}> : () -> ()
    %cst_18 = arith.constant dense<0.000000e+00> : vector<2x8x8xf32>
    %22 = tpu.matmul %20, %21, %cst_18 {dimension_numbers = #tpu.dot_dimension_numbers<[2], [2], [1], [1], [0, 0, 0, 1, 1, 1], [0], [0]>} : vector<2x8x8xbf16>, vector<2x8x8xbf16>, vector<2x8x8xf32> -> vector<2x8x8xf32>
    "tpu.trace_stop"() : () -> ()
    %cst_19 = arith.constant dense<0xFF800000> : vector<2x8xf32>
    %23 = vector.multi_reduction <maximumf>, %22, %cst_19 [2] : vector<2x8x8xf32> to vector<2x8xf32>
    %24 = vector.shape_cast %23 : vector<2x8xf32> to vector<2x8x1xf32>
    %25 = vector.broadcast %24 : vector<2x8x1xf32> to vector<2x8x8xf32>
    %26 = arith.subf %22, %25 : vector<2x8x8xf32>
    %27 = math.exp %26 : vector<2x8x8xf32>
    %cst_20 = arith.constant dense<0.000000e+00> : vector<2x8xf32>
    %28 = vector.multi_reduction <add>, %27, %cst_20 [2] : vector<2x8x8xf32> to vector<2x8xf32>
    %29 = vector.shape_cast %28 : vector<2x8xf32> to vector<2x8x1xf32>
    %30 = tpu.reciprocal %29 : vector<2x8x1xf32> -> vector<2x8x1xf32>
    %31 = vector.broadcast %30 : vector<2x8x1xf32> to vector<2x8x8xf32>
    %32 = arith.mulf %27, %31 : vector<2x8x8xf32>
    %c0_21 = arith.constant 0 : index
    %c0_22 = arith.constant 0 : index
    %c0_23 = arith.constant 0 : index
    %33 = vector.load %arg4[%c0_21, %c0_22, %c0_23] : memref<1x8x16xbf16, #tpu.memory_space<vmem>>, vector<1x8x16xbf16>
    %34 = vector.shape_cast %33 : vector<1x8x16xbf16> to vector<8x16xbf16>
    %35 = vector.extract_strided_slice %32 {offsets = [0, 0, 0], sizes = [1, 8, 8], strides = [1, 1, 1]} : vector<2x8x8xf32> to vector<1x8x8xf32>
    %36 = vector.shape_cast %35 : vector<1x8x8xf32> to vector<8x8xf32>
    %c0_24 = arith.constant 0 : index
    %c0_25 = arith.constant 0 : index
    %c0_26 = arith.constant 0 : index
    %c0_27 = arith.constant 0 : index
    %37 = vector.load %arg10[%c0_24, %c0_25, %c0_26, %c0_27] : memref<2x1x8x8xf32, #tpu.memory_space<vmem>>, vector<1x1x8x8xf32>
    %38 = vector.shape_cast %37 : vector<1x1x8x8xf32> to vector<8x8xf32>
    %39 = vector.shape_cast %36 : vector<8x8xf32> to vector<1x1x8x8xf32>
    tpu.vector_store %arg10[%c0_24, %c0_25, %c0_26, %c0_27], %39 {strides = array<i32>} : memref<2x1x8x8xf32, #tpu.memory_space<vmem>>, vector<1x1x8x8xf32>,
    %40 = arith.truncf %36 : vector<8x8xf32> to vector<8x8xbf16>
    %cst_28 = arith.constant dense<0.000000e+00> : vector<8x16xf32>
    %41 = tpu.matmul %40, %34, %cst_28 {dimension_numbers = #tpu.dot_dimension_numbers<[1], [0], [0], [1], [0, 0, 1, 1], [], []>} : vector<8x8xbf16>, vector<8x16xbf16>, vector<8x16xf32> -> vector<8x16xf32>
    %c0_29 = arith.constant 0 : index
    %c0_30 = arith.constant 0 : index
    %c0_31 = arith.constant 0 : index
    %42 = vector.load %arg9[%c0_29, %c0_30, %c0_31] : memref<1x8x32xf32, #tpu.memory_space<vmem>>, vector<1x8x16xf32>
    %43 = vector.shape_cast %42 : vector<1x8x16xf32> to vector<8x16xf32>
    %44 = vector.shape_cast %41 : vector<8x16xf32> to vector<1x8x16xf32>
    tpu.vector_store %arg9[%c0_29, %c0_30, %c0_31], %44 {strides = array<i32>} : memref<1x8x32xf32, #tpu.memory_space<vmem>>, vector<1x8x16xf32>,
    %45 = vector.extract_strided_slice %32 {offsets = [1, 0, 0], sizes = [1, 8, 8], strides = [1, 1, 1]} : vector<2x8x8xf32> to vector<1x8x8xf32>
    %46 = vector.shape_cast %45 : vector<1x8x8xf32> to vector<8x8xf32>
    %c1_32 = arith.constant 1 : index
    %c0_33 = arith.constant 0 : index
    %c0_34 = arith.constant 0 : index
    %c0_35 = arith.constant 0 : index
    %47 = vector.load %arg10[%c1_32, %c0_33, %c0_34, %c0_35] : memref<2x1x8x8xf32, #tpu.memory_space<vmem>>, vector<1x1x8x8xf32>
    %48 = vector.shape_cast %47 : vector<1x1x8x8xf32> to vector<8x8xf32>
    %49 = vector.shape_cast %46 : vector<8x8xf32> to vector<1x1x8x8xf32>
    tpu.vector_store %arg10[%c1_32, %c0_33, %c0_34, %c0_35], %49 {strides = array<i32>} : memref<2x1x8x8xf32, #tpu.memory_space<vmem>>, vector<1x1x8x8xf32>,
    %50 = arith.truncf %46 : vector<8x8xf32> to vector<8x8xbf16>
    %cst_36 = arith.constant dense<0.000000e+00> : vector<8x16xf32>
    %51 = tpu.matmul %50, %34, %cst_36 {dimension_numbers = #tpu.dot_dimension_numbers<[1], [0], [0], [1], [0, 0, 1, 1], [], []>} : vector<8x8xbf16>, vector<8x16xbf16>, vector<8x16xf32> -> vector<8x16xf32>
    %c0_37 = arith.constant 0 : index
    %c0_38 = arith.constant 0 : index
    %c16 = arith.constant 16 : index
    %52 = vector.load %arg9[%c0_37, %c0_38, %c16] : memref<1x8x32xf32, #tpu.memory_space<vmem>>, vector<1x8x16xf32>
    %53 = vector.shape_cast %52 : vector<1x8x16xf32> to vector<8x16xf32>
    %54 = vector.shape_cast %51 : vector<8x16xf32> to vector<1x8x16xf32>
    tpu.vector_store %arg9[%c0_37, %c0_38, %c16], %54 {strides = array<i32>} : memref<1x8x32xf32, #tpu.memory_space<vmem>>, vector<1x8x16xf32>,
    return
  }
  func.func @transform_0(%arg0: i32, %arg1: i32) -> (i32, i32, i32) {
    %c0_i32 = arith.constant 0 : i32
    %c0_i32_0 = arith.constant 0 : i32
    return %arg0, %arg1, %c0_i32 : i32, i32, i32
  }
  func.func @transform_1(%arg0: i32, %arg1: i32) -> (i32, i32, i32) {
    %c0_i32 = arith.constant 0 : i32
    %c0_i32_0 = arith.constant 0 : i32
    %c0_i32_1 = arith.constant 0 : i32
    return %arg0, %c0_i32, %c0_i32_0 : i32, i32, i32
  }
  func.func @transform_2(%arg0: i32, %arg1: i32) -> (i32, i32, i32) {
    %c0_i32 = arith.constant 0 : i32
    %c0_i32_0 = arith.constant 0 : i32
    %c0_i32_1 = arith.constant 0 : i32
    return %arg0, %c0_i32, %c0_i32_0 : i32, i32, i32
  }
  func.func @transform_3(%arg0: i32, %arg1: i32) -> (i32, i32) {
    %c0_i32 = arith.constant 0 : i32
    %c0_i32_0 = arith.constant 0 : i32
    %c0_i32_1 = arith.constant 0 : i32
    return %c0_i32, %c0_i32_0 : i32, i32
  }
  func.func @transform_4(%arg0: i32, %arg1: i32) -> (i32, i32) {
    %c0_i32 = arith.constant 0 : i32
    %c0_i32_0 = arith.constant 0 : i32
    %c0_i32_1 = arith.constant 0 : i32
    return %c0_i32, %c0_i32_0 : i32, i32
  }
  func.func @transform_5(%arg0: i32, %arg1: i32) -> (i32, i32) {
    %c0_i32 = arith.constant 0 : i32
    %c0_i32_0 = arith.constant 0 : i32
    %c0_i32_1 = arith.constant 0 : i32
    return %c0_i32, %c0_i32_0 : i32, i32
  }
  func.func @transform_6(%arg0: i32, %arg1: i32) -> (i32, i32) {
    %c0_i32 = arith.constant 0 : i32
    %c0_i32_0 = arith.constant 0 : i32
    %c0_i32_1 = arith.constant 0 : i32
    return %c0_i32, %c0_i32_0 : i32, i32
  }
  func.func @transform_7(%arg0: i32, %arg1: i32) -> (i32, i32, i32) {
    %c0_i32 = arith.constant 0 : i32
    %c0_i32_0 = arith.constant 0 : i32
    return %arg0, %arg1, %c0_i32 : i32, i32, i32
  }
  func.func @transform_8(%arg0: i32, %arg1: i32) -> (i32, i32, i32, i32) {
    %c0_i32 = arith.constant 0 : i32
    %c0_i32_0 = arith.constant 0 : i32
    %c0_i32_1 = arith.constant 0 : i32
    return %c0_i32, %arg0, %arg1, %c0_i32_0 : i32, i32, i32, i32
  }
}

</mosaic_0001>

<bundles_post_ra>
// kernel: tpu_custom_call.1
= control target key start
LH: loop header
LB: loop body
LE: loop exit
PB: predicated region body
PF: predicated region fallthrough
CT: control target
= control target key end

     0   :  { %14 = vsyncpa [#allocation5], 0  ;;  %s1472_s0 = inlined_call_operand.vmem [shape: bf16[2,8,32], index: 0, kind: input, shape index: {}]   ;;  %s1473_s1 = inlined_call_operand.vmem [shape: bf16[2,8,32], index: 1, kind: input, shape index: {}]   ;;  %s1474_s2 = inlined_call_operand.vmem [shape: bf16[2,8,16], index: 2, kind: input, shape index: {}]   ;;  %s1475_s3 = inlined_call_operand.vmem [shape: bf16[32,16], index: 3, kind: input, shape index: {}]   ;;  %s1476_s4 = inlined_call_operand.vmem [shape: f32[1,16], index: 4, kind: input, shape index: {}]   ;;  %s1477_s5 = inlined_call_operand.vmem [shape: bf16[32,16], index: 5, kind: input, shape index: {}]   ;;  %s1478_s6 = inlined_call_operand.vmem [shape: f32[1,16], index: 6, kind: input, shape index: {}]   ;;  %s1479_s7 = inlined_call_operand.hbm [shape: f32[2,8,32], index: 7, kind: output, shape index: {0}]   ;;  %s1480_s8 = inlined_call_operand.hbm [shape: f32[2,2,8,8], index: 8, kind: output, shape index: {1}]  }
   0x1   :  { %16 = vsyncpa [#allocation5 + $0x1], 0 }
   0x2   :  { %17 = vsyncpa [#allocation7], 0 }
   0x3   :  { %19 = vsyncpa [#allocation7 + $0x1], 0  ;;  %s1255_s27 = smov 0   ;;  %s1257_s28 = smov 0  }
   0x4   :  { %s1259_s29 = smov 0   ;;  %s1261_s30 = smov 0  }
   0x5   :  { %s1263_s9 = smov 0   ;;  %s1265_s10 = smov 0  }
   0x6 LB: > { %s923_s11 = sadd.s32 4294967295, %s1199_s10   ;;  %s924_s12 = sadd.s32 4294967294, %s1199_s10   ;;  %s1199_s10 = sphi %s1265_s10, %s25_s10   ;;  %s1195_s9 = sphi %s1263_s9, %s1490_s9   ;;  %s1191_s30 = sphi %s1261_s30, %s1489_s30   ;;  %s1187_s29 = sphi %s1259_s29, %s1488_s29   ;;  %s1183_s28 = sphi %s1257_s28, %s1487_s28   ;;  %s1179_s27 = sphi %s1255_s27, %s1486_s27  }
   0x7   : > { %s37_s13 = sadd.s32 1, %s1195_s9  ;;  %s210_s14 = sadd.s32 1, %s1187_s29 }
   0x8   : > { %p39_p0 = scmp.ge.s32.totalorder %s37_s13, 2  ;;  %p220_p1 = scmp.ne.s32.totalorder %s1187_s29, %s1183_s28 }
   0x9   : > { %p221_p2 = scmp.eq.s32.totalorder %s923_s11, 1  ;;  %p226_p3 = scmp.ne.s32.totalorder %s1183_s28, %s1179_s27 }
   0xa   : > { %s1492_s13 = smov (%p39_p0, %s37_s13), 0  ;;  %p227_p5 = scmp.eq.s32.totalorder %s924_s12, 1 }
   0xb   : > { %p1295_p4 = por %p221_p2, %p220_p1  ;;  %s205_s16 = ssub.s32 %s1195_s9, %s1492_s13 }
   0xc   : > { %p927_p6 = scmp.ge.s32.totalorder %s1199_s10, 1  ;;  %p208_p7 = scmp.eq.s32.totalorder %s205_s16, 0 }
   0xd   : > { %p1302_p8 = por %p227_p5, %p226_p3  ;;  %p309_p9 = scmp.lt.s32.totalorder %s1199_s10, 3 }
   0xe   : > { %s1308_s18 = scalar_select %p208_p7, %s1187_s29, %s210_s14  }
   0xf   : > { %p310_p10 = pnand %p927_p6, %p309_p9 }
  0x10   : > { %v1077_v0 = vld [vmem:[%s1477_s5] sm:$0xff] (!%p310_p10)   ;;  %v1201_v1 = vmov (!%p310_p10), 0.0   ;;  %v1078_v2 = vld [vmem:[%s1477_s5 + $0x8] sm:$0xff] (!%p310_p10)   ;;  %vm1202_vm0 = vmmov (!%p310_p10), 0   ;;  %p358_p11 = scmp.lt.s32.totalorder (!%p310_p10), %s1191_s30, 1  ;;  %vm402_vm1 = vcmask (!%p310_p10), 261120  }
  0x11   : > { %313 = sbr.rel (%p310_p10) target bundleno = 1245 (0x4dd), region = 48  ;;  %970 = vmatprep.subr.bf16.mxu0 (!%p310_p10), %v1201_v1  ;;  %978 = vmatprep.subr.bf16.mxu1 (!%p310_p10), %v1201_v1  ;;  %v1079_v3 = vld [vmem:[%s1475_s3] sm:$0xff] (!%p310_p10)   ;;  %v1080_v4 = vld [vmem:[%s1475_s3 + $0x8] sm:$0xff] (!%p310_p10)   ;;  %vm447_vm2 = vcmask (!%p310_p10), 60416   ;;  %s1203_s11 = smov (!%p310_p10), 120   ;;  %vm540_vm3 = vcmask (!%p310_p10), 64512  }
  0x12   : > { %971 = vmatpush3.bf16.msra.mxu0 (!%p310_p10), %v1077_v0  ;;  %974 = vmatprep.mubr.msk.bf16.mxu0 (!%p310_p10), %vm1202_vm0, %v1201_v1  ;;  %v933_v7 = vld [vmem:[%s1478_s6] ss:$0 sm:$0xff] (!%p310_p10)  ;;  %vm661_vm4 = vcmask (!%p310_p10), 1043456   ;;  %s1377_s20 = sand.u32 (!%p310_p10), 1, %s1183_s28   ;;  %s1481_s23 = sshll.u32 (!%p310_p10), %s1191_s30, 7 }
  0x13   : > { %972 = vmatprep.subr.bf16.mxu0 (!%p310_p10), %v1201_v1  ;;  %982 = vmatprep.mubr.msk.bf16.mxu1 (!%p310_p10), %vm1202_vm0, %v1201_v1  ;;  %v938_v9 = vld [vmem:[%s1476_s4] ss:$0 sm:$0xff] (!%p310_p10)  ;;  %s929_s21 = sshll.u32 (!%p310_p10), %s1377_s20, 4  ;;  %s1392_s26 = scalar_lea.hbm (!%p310_p10), %s1480_s8, %s1481_s23 }
  0x14   : > { %979 = vmatpush3.bf16.msra.mxu1 (!%p310_p10), %v1079_v3  ;;  %s1204_s16 = smov (!%p310_p10), [#allocation6]  }
  0x15   : > { %980 = vmatprep.subr.bf16.mxu1 (!%p310_p10), %v1201_v1 }
  0x16   : > { %973 = vmatpush3.bf16.msra.mxu0 (!%p310_p10), %v1078_v2 }
  0x17   : > { %986 = vmatprep.subr.bf16.mxu0 (!%p310_p10), %v1201_v1 }
  0x18   : > { %s359_s25 = scalar_select %p358_p11, %s1191_s30, 1  ;;  %981 = vmatpush3.bf16.msra.mxu1 %v1080_v4 }
  0x19   : > { %992 = vmatprep.subr.bf16.mxu1 %v1201_v1 }
  0x1a   : > { %s1332_s12 = sshll.u32 %s359_s25, 2 }
  0x1b   : > { %s368_s19 = scalar_lea.vmem %s1473_s1, %s1332_s12  ;;  %s364_s22 = scalar_lea.vmem %s1472_s0, %s1332_s12 }
  0x1c   : > { %v378_v5 = vld [vmem:[%s368_s19] sm:$0xf]  ;;  %s372_s19 = scalar_lea.vmem %s1474_s2, %s1332_s12  ;;  %s357_s12 = scalar_lea.vmem [#allocation6], %s929_s21 }
  0x1d   : > { %v457_v6 = vld [vmem:[%s364_s22] sm:$0xf]  ;;  %975 = vmatmul.mubr.msk.bf16.vlgmr.msra.gmra.mrb[0].mxu0 %vm402_vm1, %v378_v5  ;;  %s792_s22 = sshll.u32 %s357_s12, 4  ;;  %s1385_s22 = int_to_ptr.vmem [resolvable:$true] %s792_s22 }
  0x1e   : > { %988 = vmatprep.mubr.msk.bf16.mxu0 %vm1202_vm0, %v1201_v1  ;;  %983 = vmatmul.mubr.msk.bf16.vlgmr.msra.gmra.mrb[0].mxu1 %vm402_vm1, %v457_v6  ;;  %v655_v49 = vld [vmem:[%s372_s19] sm:$0xf]  ;;  %s1089_s14 = scalar_lea.vmem %s1385_s22, 256  ;;  %s1093_s19 = sshll.u32 %s1204_s16, 4  ;;  %s1094_s19 = int_to_ptr.vmem [resolvable:$false] %s1093_s19 }
  0x1f   : > { %994 = vmatprep.mubr.msk.bf16.mxu1 %vm1202_vm0, %v1201_v1  ;;  %v663_v50 = vsel %vm661_vm4, %v655_v49, 0  ;;  %p1090_p12 = scmp.ne.s32.totalorder %s1385_s22, %s1089_s14  ;;  %s1095_s21 = scalar_lea.vmem %s1094_s19, 512 }
  0x20   : > { %p1096_p1 = scmp.lt.s32.totalorder %s1385_s22, %s1094_s19  ;;  %p1097_p2 = scmp.lt.s32.totalorder %s1095_s21, %s1089_s14 }
  0x21   : > { %p1091_p13 = pnand %p1090_p12, %p1295_p4 }
  0x22   : > { %p1098_p3 = por %p1097_p2, %p1096_p1 }
  0x23   : > { %p1092_p0 = pneg %p1091_p13 }
  0x25   : > { %p1099_p5 = pnand %p1098_p3, %p1092_p0 }
  0xf0   : > { %v440_v8 = vpop.f32.mrb[0].mxu0 }
  0xf1   : > { %v441_v10 = vadd.f32 %v933_v7, %v440_v8  ;;  %v976_v11 = vpop.f32.mrb[1].mxu0  ;;  %v519_v13 = vpop.f32.mrb[0].mxu1 }
  0xf2   : > { %v443_v12 = vpop.f32.mrb[2].mxu0  ;;  %v520_v16 = vadd.f32 %v938_v9, %v519_v13  ;;  %v984_v17 = vpop.f32.mrb[1].mxu1 }
  0xf3   : > { %v446_v14 = vpack.c.bf16 %v441_v10, %v441_v10  ;;  %v977_v15 = vpop.f32.mrb[3].mxu0  ;;  %v522_v18 = vpop.f32.mrb[2].mxu1 }
  0xf4   : > { %v525_v19 = vpack.c.bf16 %v520_v16, %v520_v16  ;;  %v985_v20 = vpop.f32.mrb[3].mxu1 }
  0xf5   : > { %448 = vst.msk [vmem:[#allocation2] sm:$0xf] %vm447_vm2, %v446_v14  ;;  %452 = vrot.lane.b32.xlu0 %v446_v14, %s1203_s11 }
  0xf6   : > { %527 = vst.msk [vmem:[#allocation3] sm:$0xf] %vm447_vm2, %v525_v19 }
  0xf9   : > { %531 = vrot.lane.b32.xlu0 %v525_v19, %s1203_s11 }
  0xfc   : > { %v538_v21 = vld [vmem:[#allocation2] sm:$0xf] }
  0xfd   : > { %v545_v22 = vsel %vm540_vm3, %v538_v21, 0  ;;  %v536_v23 = vld [vmem:[#allocation3] sm:$0xf] }
  0xfe   : > { %987 = vmatpush3.bf16.xpose.msra.mxu0 %v545_v22 }
  0xff   : > { %998 = vmatprep.subr.bf16.mxu0 %v1201_v1 }
 0x105   : > { %989 = vmatmul.mubr.msk.bf16.vlgmr.msra.gmra.mrb[4].mxu0 %vm540_vm3, %v536_v23 }
 0x106   : > { %1000 = vmatprep.mubr.msk.bf16.mxu0 %vm1202_vm0, %v1201_v1  ;;  %999 = vmatpush3.bf16.msra.mxu0 %v663_v50 }
 0x167   : > { %v453_v24 = vpop.permute.xlu0 %452 }
 0x168   : > { %456 = vst.msk [vmem:[#allocation2 + $0x4] sm:$0xf] %vm447_vm2, %v453_v24 }
 0x16b   : > { %v532_v25 = vpop.permute.xlu0 %531 }
 0x16c   : > { %535 = vst.msk [vmem:[#allocation3 + $0x4] sm:$0xf] %vm447_vm2, %v532_v25 }
 0x16f   : > { %v539_v26 = vld [vmem:[#allocation2 + $0x4] sm:$0xf] }
 0x170   : > { %v591_v27 = vsel %vm540_vm3, %v539_v26, 0 }
 0x171   : > { %993 = vmatpush3.bf16.xpose.msra.mxu1 %v591_v27 }
 0x172   : > { %1004 = vmatprep.subr.bf16.mxu1 %v1201_v1 }
 0x173   : > { %v537_v28 = vld [vmem:[#allocation3 + $0x4] sm:$0xf] }
 0x178   : > { %995 = vmatmul.mubr.msk.bf16.vlgmr.msra.gmra.mrb[4].mxu1 %vm540_vm3, %v537_v28 }
 0x179   : > { %1006 = vmatprep.mubr.msk.bf16.mxu1 %vm1202_vm0, %v1201_v1  ;;  %1005 = vmatpush3.bf16.msra.mxu1 %v663_v50 }
 0x1d8   : > { %v581_v29 = vpop.f32.mrb[4].mxu0 }
 0x1d9   : > { %v990_v30 = vpop.f32.mrb[5].mxu0  ;;  %v633_v38 = vsel %vm540_vm3, %v581_v29, -inf }
 0x1da   : > { %v584_v31 = vpop.f32.mrb[6].mxu0 }
 0x1db   : > { %v991_v32 = vpop.f32.mrb[7].mxu0 }
 0x24b   : > { %v627_v33 = vpop.f32.mrb[4].mxu1 }
 0x24c   : > { %v996_v34 = vpop.f32.mrb[5].mxu1  ;;  %v636_v35 = vsel %vm540_vm3, %v627_v33, -inf }
 0x24d   : > { %637 = vmax.xlane.f32.xlu1 %v636_v35  ;;  %v630_v36 = vpop.f32.mrb[6].mxu1 }
 0x24e   : > { %v997_v37 = vpop.f32.mrb[7].mxu1 }
 0x251   : > { %634 = vmax.xlane.f32.xlu1 %v633_v38 }
 0x2da   : > { %v638_v39 = vpop.xlane.xlu1 %637 }
 0x2db   : > { %v640_v40 = vsub.f32 %v627_v33, %v638_v39 }
 0x2dd   : > { %v643_v41 = vmul.f32 1.442695, %v640_v40 }
 0x2de   : > { %v635_v42 = vpop.xlane.xlu1 %634 }
 0x2df   : > { %1081 = vpow2.f32 %v643_v41  ;;  %v639_v43 = vsub.f32 %v581_v29, %v635_v42 }
 0x2e1   : > { %v641_v44 = vmul.f32 1.442695, %v639_v43 }
 0x2e3   : > { %1083 = vpow2.f32 %v641_v44 }
 0x2e9   : > { %v1082_v45 = vpop.eup %1081 }
 0x2ea   : > { %v648_v46 = vsel %vm540_vm3, %v1082_v45, 0.0 }
 0x2eb   : > { %649 = vadd.xlane.f32.xlu0 %v648_v46 }
 0x2ed   : > { %v1084_v47 = vpop.eup %1083 }
 0x2ee   : > { %v645_v48 = vsel %vm540_vm3, %v1084_v47, 0.0 }
 0x2ef   : > { %646 = vadd.xlane.f32.xlu1 %v645_v48 }
 0x378   : > { %v650_v51 = vpop.xlane.xlu0 %649 }
 0x379   : > { %1085 = vrcp.f32 %v650_v51 }
 0x37c   : > { %v647_v52 = vpop.xlane.xlu1 %646 }
 0x37d   : > { %1087 = vrcp.f32 %v647_v52 }
 0x383   : > { %v1086_v53 = vpop.eup %1085 }
 0x384   : > { %v654_v54 = vmul.f32 %v1086_v53, %v1082_v45 }
 0x386   : > { %v709_v55 = vpack.c.bf16 %v654_v54, %v654_v54  ;;  %946 = vst.msk [vmem:[%s357_s12 + $0x8] sm:$0xff] %vm540_vm3, %v654_v54 }
 0x387   : > { %v1088_v56 = vpop.eup %1087 }
 0x388   : > { %v653_v57 = vmul.f32 %v1088_v56, %v1084_v47  ;;  %1007 = vmatmul.mubr.msk.bf16.vlgmr.msra.gmra.mrb[8].mxu1 %vm540_vm3, %v709_v55 }
 0x38a   : > { %v657_v58 = vpack.c.bf16 %v653_v57, %v653_v57  ;;  %656 = vst.msk [vmem:[%s357_s12] sm:$0xff] %vm540_vm3, %v653_v57 }
 0x38c   : > { %1001 = vmatmul.mubr.msk.bf16.vlgmr.msra.gmra.mrb[8].mxu0 %vm540_vm3, %v657_v58 }
 0x38d   : > { %1102 = shalt.err (!%p1099_p5)
}
 0x38e   : > { %s1103_s12 = scalar_lea.hbm %s1392_s26, 256  ;;  %s1107_s16 = scalar_lea.hbm %s1480_s8, 512 }
 0x38f   : > { %p1104_p6 = scmp.ne.s32.totalorder %s1392_s26, %s1103_s12  ;;  %p1108_p10 = scmp.lt.u32.totalorder %s1392_s26, %s1480_s8 }
 0x390   : > { %p1109_p11 = scmp.lt.u32.totalorder %s1107_s16, %s1103_s12  ;;  %p1111_p13 = scmp.lt.u32.totalorder %s1103_s12, %s1392_s26 }
 0x391   : > { %p1105_p7 = pnand %p1104_p6, %p1295_p4 }
 0x392   : > { %p1110_p12 = por %p1109_p11, %p1108_p10 }
 0x393   : > { %p1106_p9 = pneg %p1105_p7 }
 0x394   : > { %p1112_p0 = por %p1111_p13, %p1110_p12 }
 0x396   : > { %p1113_p1 = pnand %p1112_p0, %p1106_p9 }
 0x398   : > { %1116 = shalt.err (!%p1113_p1)
}
 0x399   : > { %s1205_s14 = smov 128   ;;  %s1206_s21 = smov 256   ;;  %vm705_vm5 = vcmask 130048   ;;  %vm757_vm6 = vcmask 261248  }
 0x39a   : > { %s1207_s11 = smov 8   ;;  %s1484_s24 = scalar_lea.sflag [#allocation7], %s1377_s20 }
 0x39b   : > { %1011 = dma.vmem_to_hbm [thread:$0]  (%p1295_p4), %s1385_s22, 256, %s1392_s26, %s1484_s24, %s1205_s14, %s1206_s21, %s1207_s11  }
 0x39c   : > { %s928_s25 = sshll.u32 %s1377_s20, 3  ;;  %s1208_s23 = smov 16  }
 0x39d   : > { %s350_s12 = scalar_lea.vmem [#allocation4], %s928_s25  ;;  %s1485_s22 = sshll.u32 %s1191_s30, 7 }
 0x39e   : > { %s779_s16 = sshll.u32 %s350_s12, 4  ;;  %s1424_s19 = scalar_lea.hbm %s1479_s7, %s1485_s22  ;;  %s1426_s16 = int_to_ptr.vmem [resolvable:$true] %s779_s16 }
 0x39f   : > { %s760_s14 = scalar_lea.sflag [#allocation5], %s1377_s20  ;;  %s1117_s21 = scalar_lea.vmem %s1426_s16, 128 }
 0x3a0   : > { %p1118_p2 = scmp.ne.s32.totalorder %s1426_s16, %s1117_s21  ;;  %s1209_s24 = smov [#allocation4]  }
 0x3a1   : > { %s1121_s30 = sshll.u32 %s1209_s24, 4  ;;  %s1122_s30 = int_to_ptr.vmem [resolvable:$false] %s1121_s30 }
 0x3a2   : > { %p1119_p3 = pnand %p1118_p2, %p1295_p4  ;;  %s1123_s25 = scalar_lea.vmem %s1122_s30, 256 }
 0x3a3   : > { %p1124_p6 = scmp.lt.s32.totalorder %s1426_s16, %s1122_s30  ;;  %p1125_p7 = scmp.lt.s32.totalorder %s1123_s25, %s1117_s21 }
 0x3a4   : > { %p1120_p5 = pneg %p1119_p3 }
 0x3a5   : > { %p1126_p9 = por %p1125_p7, %p1124_p6 }
 0x3a7   : > { %p1127_p10 = pnand %p1126_p9, %p1120_p5 }
 0x45b   : > { %v747_v59 = vpop.f32.mrb[8].mxu1 }
 0x45c   : > { %754 = vrot.lane.b32.xlu1 %v747_v59, %s1208_s23  ;;  %v1008_v60 = vpop.f32.mrb[9].mxu1 }
 0x45d   : > { %v750_v61 = vpop.f32.mrb[10].mxu1 }
 0x45e   : > { %v1009_v62 = vpop.f32.mrb[11].mxu1 }
 0x45f   : > { %v699_v63 = vpop.f32.mrb[8].mxu0 }
 0x460   : > { %706 = vst.msk [vmem:[%s350_s12] sm:$0xff] %vm705_vm5, %v699_v63  ;;  %v1002_v0 = vpop.f32.mrb[9].mxu0 }
 0x461   : > { %v702_v1 = vpop.f32.mrb[10].mxu0 }
 0x462   : > { %v1003_v2 = vpop.f32.mrb[11].mxu0 }
 0x4ce   : > { %v755_v3 = vpop.permute.xlu1 %754 }
 0x4cf   : > { %758 = vst.msk [vmem:[%s350_s12] sm:$0xff] %vm757_vm6, %v755_v3 }
 0x4d0   : > { %1130 = shalt.err (!%p1127_p10)
}
 0x4d1   : > { %s1131_s20 = scalar_lea.hbm %s1424_s19, 128  ;;  %s1135_s22 = scalar_lea.hbm %s1479_s7, 256 }
 0x4d2   : > { %p1132_p11 = scmp.ne.s32.totalorder %s1424_s19, %s1131_s20  ;;  %p1136_p0 = scmp.lt.u32.totalorder %s1424_s19, %s1479_s7 }
 0x4d3   : > { %p1137_p1 = scmp.lt.u32.totalorder %s1135_s22, %s1131_s20  ;;  %p1139_p3 = scmp.lt.u32.totalorder %s1131_s20, %s1424_s19 }
 0x4d4   : > { %p1133_p12 = pnand %p1132_p11, %p1295_p4 }
 0x4d5   : > { %p1138_p2 = por %p1137_p1, %p1136_p0 }
 0x4d6   : > { %p1134_p13 = pneg %p1133_p12 }
 0x4d7   : > { %p1140_p5 = por %p1139_p3, %p1138_p2 }
 0x4d9   : > { %p1141_p6 = pnand %p1140_p5, %p1134_p13 }
 0x4db   : > { %1144 = shalt.err (!%p1141_p6)
}
 0x4dc   : > { %1010 = dma.vmem_to_hbm [thread:$0]  (%p1295_p4), %s1426_s16, 128, %s1424_s19, %s760_s14  }
 0x4dd PF: > { %p1021_p7 = scmp.ge.s32.totalorder %s1199_s10, 2  ;;  %s807_s21 = sand.u32 1, %s1179_s27  }
 0x4de   : > { %s808_s24 = scalar_lea.sflag [#allocation5], %s807_s21 }
 0x4df   : > { %p1015_p9 = pnand %p1021_p7, %p1302_p8 }
 0x4e1   : > { %1170 = dma.done.wait (!%p1015_p9), %s808_s24, 128  }
 0x4e2   : > { %1172 = vsyncadd (!%p1015_p9), %s808_s24, 4294967168  ;;  %s817_s30 = scalar_lea.sflag [#allocation7], %s807_s21 }
 0x4e3   : > { %1174 = dma.done.wait (!%p1015_p9), %s817_s30, 256  }
 0x4e4   : > { %1176 = vsyncadd (!%p1015_p9), %s817_s30, 4294967040  ;;  %s25_s10 = sadd.s32 1, %s1199_s10   ;;  %s1486_s27 = smov %s1183_s28 }
 0x4e5   : > { %p22_p10 = scmp.ge.s32.totalorder %s25_s10, 4   ;;  %s1487_s28 = smov %s1187_s29 }
 0x4e6   : > { %s1488_s29 = smov %s1308_s18  ;;  %s1489_s30 = smov %s1195_s9 }
 0x4e7   : > { %s1490_s9 = smov %s1492_s13  ;;  %24 = sbr.rel (!%p22_p10) target bundleno = 6 (0x6), region = 113 }
 0x4ee   :  { %822 = vsyncpa [#allocation5], 1 }
 0x4ef   :  { %824 = vsyncpa [#allocation5 + $0x1], 1 }
 0x4f0   :  { %825 = vsyncpa [#allocation7], 1 }
 0x4f1   :  { %827 = vsyncpa [#allocation7 + $0x1], 1 }

</bundles_post_ra>
